<compile_context>
chip_gen: v7x
topology: tpu7x:2x2x1
jax: 0.10.0
libtpu: 0.0.40
codegen_flags: <defaults>
</compile_context>

<pallas_src>
import math

import jax
import jax.numpy as jnp
from jax import lax
from jax.experimental import pallas as pl
from jax.experimental.pallas import tpu as pltpu


# ---------------------------------------------------------------------------
# Static layer configuration (mirrors SimpleCNN2.__init__ bookkeeping)
# ---------------------------------------------------------------------------

def _set_list(p, n):
    if isinstance(p, (list, tuple)):
        assert len(p) == n
        return list(p)
    return [p] * n


def make_layer_configs(freq_num, frame_num, kernel_size, dilation_size,
                       layer_num, inter_ch, pool_size):
    kernel_size = _set_list(kernel_size, layer_num)
    dilation_size = _set_list(dilation_size, layer_num)
    inter_ch = _set_list(inter_ch, layer_num)
    pool_size = _set_list(pool_size, layer_num)
    cfgs = []
    L = frame_num
    for l in range(layer_num):
        c_in = freq_num if l == 0 else inter_ch[l - 1]
        c_out = inter_ch[l]
        K, dil, pool = kernel_size[l], dilation_size[l], pool_size[l]
        L_out = L - dil * (K - 1)              # "valid" dilated conv
        L_pool = L_out // pool                 # floor, like nn.MaxPool1d
        assert L_out > 0 and L_pool > 0, "invalid SimpleCNN2 config"
        cfgs.append(dict(K=K, dil=dil, pool=pool, C_in=c_in, C_out=c_out,
                         L_in=L, L_out=L_out, L_pool=L_pool))
        L = L_pool
    return cfgs


# ---------------------------------------------------------------------------
# Fused Pallas kernel: all conv layers + flatten + Linear in one invocation
# ---------------------------------------------------------------------------

def _make_fused_kernel(cfgs, B, out_features, has_pool_scratch):
    n_layers = len(cfgs)
    L_last = cfgs[-1]["L_pool"]

    def kernel(*refs):
        it = iter(refs)
        x_ref = next(it)                                   # (B, L_in0, C_in0)
        conv_w, conv_b = [], []
        for _ in range(n_layers):
            conv_w.append(next(it))                        # (K, C_in, C_out)
            conv_b.append(next(it))                        # (1, 1, C_out)
        wlin_ref = next(it)                                # (L_last, C_last, O)
        blin_ref = next(it)                                # (1, O)
        o_ref = next(it)                                   # (B, O)
        pool_scr = next(it) if has_pool_scratch else None  # (B, maxL, maxC) VMEM

        # Whole-batch activation value, channel-last.
        h = x_ref[...]                                     # (B, L_in0, C_in0)

        for l, cfg in enumerate(cfgs):
            K, dil, pool = cfg["K"], cfg["dil"], cfg["pool"]
            C_in, C_out = cfg["C_in"], cfg["C_out"]
            L_out, L_pool = cfg["L_out"], cfg["L_pool"]

            # ---- Conv1d: K accumulated batched dots (weights loaded once/layer) ----
            w_all = conv_w[l][...]                         # (K, C_in, C_out)
            acc = None
            for k in range(K):
                h_k = h[:, k * dil:k * dil + L_out, :]     # (B, L_out, C_in)
                w_k = jnp.broadcast_to(w_all[k], (B, C_in, C_out))
                d = jnp.einsum("blc,bco->blo", h_k, w_k,
                               preferred_element_type=jnp.float32)
                acc = d if acc is None else acc + d
            acc = jnp.maximum(acc + conv_b[l][...], 0.0)   # bias + ReLU, (B,L_out,C_out)

            # ---- MaxPool1d(pool): one batched store + strided reads + max ----------
            if pool == 1:
                h = acc[:, :L_pool, :]
            else:
                pool_scr[:, :L_out, :C_out] = acc
                pooled = pool_scr[:, pl.ds(0, L_pool, stride=pool), :C_out]
                for p in range(1, pool):
                    pooled = jnp.maximum(
                        pooled,
                        pool_scr[:, pl.ds(p, L_pool, stride=pool), :C_out])
                h = pooled                                 # (B, L_pool, C_out)

        # ---- flatten + Linear, fully in registers -------------------------------
        # flat[b, t*C + c] == torch_flat[b, c*L + t]; the Linear weight was
        # pre-permuted to (L_last, C_last, O) so accumulating per-timestep dots
        # reproduces torch.flatten(x, 1) @ W.T exactly.
        out = jnp.zeros((B, out_features), jnp.float32)
        for t in range(L_last):
            out = out + jnp.dot(h[:, t, :], wlin_ref[t],
                                preferred_element_type=jnp.float32)
        o_ref[...] = out + blin_ref[...]

    return kernel


def make_fused_forward(cfgs, B, out_features):
    n_layers = len(cfgs)
    needs_pool = any(cfg["pool"] > 1 for cfg in cfgs)
    kernel = _make_fused_kernel(cfgs, B, out_features, needs_pool)

    scratch_shapes = []
    if needs_pool:
        # Single shared pooling scratch, sized for the largest layer and reused
        # sequentially (peak VMEM = max over layers, not sum).
        maxL = max(cfg["L_out"] for cfg in cfgs if cfg["pool"] > 1)
        maxC = max(cfg["C_out"] for cfg in cfgs if cfg["pool"] > 1)
        scratch_shapes.append(pltpu.VMEM((B, maxL, maxC), jnp.float32))

    n_in = 1 + 2 * n_layers + 2
    vmem = pl.BlockSpec(memory_space=pltpu.MemorySpace.VMEM)
    call = pl.pallas_call(
        kernel,
        out_shape=jax.ShapeDtypeStruct((B, out_features), jnp.float32),
        in_specs=[vmem] * n_in,
        out_specs=vmem,
        scratch_shapes=scratch_shapes,
    )

    @jax.jit
    def forward(x_ncl, *prep_args):
        x_nlc = jnp.transpose(x_ncl, (0, 2, 1))   # NCL -> NLC once (channels -> lanes)
        return call(x_nlc, *prep_args)

    return forward


# ---------------------------------------------------------------------------
# Parameter init (PyTorch layout) + one-time layout prep for the kernel
# ---------------------------------------------------------------------------

def init_params(key, cfgs, out_features):
    """Parameters in the PyTorch layout (Conv1d: (C_out, C_in, K), Linear: (O, F))."""
    params = {"conv": []}
    for cfg in cfgs:
        c_in, c_out, K = cfg["C_in"], cfg["C_out"], cfg["K"]
        key, kw, kb = jax.random.split(key, 3)
        bound = 1.0 / math.sqrt(c_in * K)
        w = jax.random.uniform(kw, (c_out, c_in, K), jnp.float32, -bound, bound)
        b = jax.random.uniform(kb, (c_out,), jnp.float32, -bound, bound)
        params["conv"].append({"w": w, "b": b})

    F = cfgs[-1]["L_pool"] * cfgs[-1]["C_out"]
    key, kw, kb = jax.random.split(key, 3)
    bound = 1.0 / math.sqrt(F)
    params["reg_w"] = jax.random.uniform(kw, (out_features, F), jnp.float32, -bound, bound)
    params["reg_b"] = jax.random.uniform(kb, (out_features,), jnp.float32, -bound, bound)
    return params


def prepare_params(params, cfgs):
    """Hoist ALL weight/bias layout work out of the forward path (done once)."""
    args = []
    for layer, cfg in zip(params["conv"], cfgs):
        C_out = cfg["C_out"]
        # (C_out, C_in, K) -> (K, C_in, C_out): per-tap weights, matching the
        # per-tap accumulated dots in the kernel.
        args.append(jnp.transpose(layer["w"], (2, 1, 0)))
        args.append(layer["b"].reshape(1, 1, C_out))

    L_last, C_last = cfgs[-1]["L_pool"], cfgs[-1]["C_out"]
    O = params["reg_w"].shape[0]
    # Fold the NCL flatten permutation into the Linear weight:
    #   kernel uses h[b, t, c] with weight w_lin[t, c, o] == reg_w[o, c*L_last + t]
    w_lin = params["reg_w"].reshape(O, C_last, L_last).transpose(2, 1, 0)
    args.append(w_lin)                                     # (L_last, C_last, O)
    args.append(params["reg_b"].reshape(1, O))
    return args


# ---------------------------------------------------------------------------
# Pure-JAX reference (same math, no Pallas) for the correctness check
# ---------------------------------------------------------------------------

def reference_forward(params, cfgs, x_ncl):
    h = x_ncl
    for layer, cfg in zip(params["conv"], cfgs):
        h = lax.conv_general_dilated(
            h, layer["w"], window_strides=(1,), padding="VALID",
            rhs_dilation=(cfg["dil"],),
            dimension_numbers=("NCH", "OIH", "NCH"),
        ) + layer["b"][None, :, None]
        h = jnp.maximum(h, 0.0)
        p = cfg["pool"]
        h = lax.reduce_window(h, -jnp.inf, lax.max,
                              window_dimensions=(1, 1, p),
                              window_strides=(1, 1, p),
                              padding="VALID")
    h = h.reshape(h.shape[0], -1)
    return h @ params["reg_w"].T + params["reg_b"]


# ---------------------------------------------------------------------------

if __name__ == "__main__":
    # Small config consistent with SimpleCNN2(freq_num, frame_num, ...)
    B = 2
    freq_num = 4        # Conv1d input channels
    frame_num = 32      # time frames
    layer_num = 2
    kernel_size = 3
    dilation_size = 1
    inter_ch = 8
    pool_size = 2
    out_features = 1

    cfgs = make_layer_configs(freq_num, frame_num, kernel_size, dilation_size,
                              layer_num, inter_ch, pool_size)

    key = jax.random.PRNGKey(0)
    key, kx = jax.random.split(key)
    x = jax.random.normal(kx, (B, freq_num, frame_num), jnp.float32)

    params = init_params(key, cfgs, out_features)          # PyTorch-layout params
    prep_args = prepare_params(params, cfgs)               # kernel-layout params (once)
    forward = make_fused_forward(cfgs, B, out_features)    # single fused pallas_call

    y = jax.block_until_ready(forward(x, *prep_args))

    y_ref = jax.block_until_ready(reference_forward(params, cfgs, x))
    assert y.shape == (B, out_features), y.shape
    assert jnp.allclose(y, y_ref, rtol=1e-3, atol=1e-3), (y, y_ref)

    print("KERNEL_OK")
</pallas_src>

<mosaic_0001>
module attributes {stable_mosaic.version = 11 : i64} {
  func.func @kernel(%arg0: memref<2x32x4xf32, #tpu.memory_space<vmem>>, %arg1: memref<3x4x8xf32, #tpu.memory_space<vmem>>, %arg2: memref<1x1x8xf32, #tpu.memory_space<vmem>>, %arg3: memref<3x8x8xf32, #tpu.memory_space<vmem>>, %arg4: memref<1x1x8xf32, #tpu.memory_space<vmem>>, %arg5: memref<6x8x1xf32, #tpu.memory_space<vmem>>, %arg6: memref<1x1xf32, #tpu.memory_space<vmem>>, %arg7: memref<2x1xf32, #tpu.memory_space<vmem>>, %arg8: memref<2x30x8xf32, #tpu.memory_space<vmem>>) attributes {dimension_semantics = [], scalar_prefetch = 0 : i64, scratch_operands = 1 : i64, tpu.core_type = #tpu.core_type<tc>} {
    %c0 = arith.constant 0 : index
    %c0_0 = arith.constant 0 : index
    %c0_1 = arith.constant 0 : index
    %0 = vector.load %arg0[%c0, %c0_0, %c0_1] : memref<2x32x4xf32, #tpu.memory_space<vmem>>, vector<2x32x4xf32>
    %c0_2 = arith.constant 0 : index
    %c0_3 = arith.constant 0 : index
    %c0_4 = arith.constant 0 : index
    %1 = vector.load %arg1[%c0_2, %c0_3, %c0_4] : memref<3x4x8xf32, #tpu.memory_space<vmem>>, vector<3x4x8xf32>
    %2 = vector.extract_strided_slice %0 {offsets = [0, 0, 0], sizes = [2, 30, 4], strides = [1, 1, 1]} : vector<2x32x4xf32> to vector<2x30x4xf32>
    %3 = vector.extract_strided_slice %1 {offsets = [0, 0, 0], sizes = [1, 4, 8], strides = [1, 1, 1]} : vector<3x4x8xf32> to vector<1x4x8xf32>
    %4 = vector.shape_cast %3 : vector<1x4x8xf32> to vector<4x8xf32>
    %5 = vector.shape_cast %4 : vector<4x8xf32> to vector<1x4x8xf32>
    %6 = vector.broadcast %5 : vector<1x4x8xf32> to vector<2x4x8xf32>
    "tpu.trace_start"() <{level = 10 : i32, message = "blc,bco->blo"}> : () -> ()
    %cst = arith.constant dense<0.000000e+00> : vector<2x30x8xf32>
    %7 = tpu.matmul %2, %6, %cst {dimension_numbers = #tpu.dot_dimension_numbers<[2], [1], [1], [2], [0, 0, 0, 1, 1, 2], [0], [0]>} : vector<2x30x4xf32>, vector<2x4x8xf32>, vector<2x30x8xf32> -> vector<2x30x8xf32>
    "tpu.trace_stop"() : () -> ()
    %8 = vector.extract_strided_slice %0 {offsets = [0, 1, 0], sizes = [2, 30, 4], strides = [1, 1, 1]} : vector<2x32x4xf32> to vector<2x30x4xf32>
    %9 = vector.extract_strided_slice %1 {offsets = [1, 0, 0], sizes = [1, 4, 8], strides = [1, 1, 1]} : vector<3x4x8xf32> to vector<1x4x8xf32>
    %10 = vector.shape_cast %9 : vector<1x4x8xf32> to vector<4x8xf32>
    %11 = vector.shape_cast %10 : vector<4x8xf32> to vector<1x4x8xf32>
    %12 = vector.broadcast %11 : vector<1x4x8xf32> to vector<2x4x8xf32>
    "tpu.trace_start"() <{level = 10 : i32, message = "blc,bco->blo"}> : () -> ()
    %cst_5 = arith.constant dense<0.000000e+00> : vector<2x30x8xf32>
    %13 = tpu.matmul %8, %12, %cst_5 {dimension_numbers = #tpu.dot_dimension_numbers<[2], [1], [1], [2], [0, 0, 0, 1, 1, 2], [0], [0]>} : vector<2x30x4xf32>, vector<2x4x8xf32>, vector<2x30x8xf32> -> vector<2x30x8xf32>
    "tpu.trace_stop"() : () -> ()
    %14 = arith.addf %7, %13 : vector<2x30x8xf32>
    %15 = vector.extract_strided_slice %0 {offsets = [0, 2, 0], sizes = [2, 30, 4], strides = [1, 1, 1]} : vector<2x32x4xf32> to vector<2x30x4xf32>
    %16 = vector.extract_strided_slice %1 {offsets = [2, 0, 0], sizes = [1, 4, 8], strides = [1, 1, 1]} : vector<3x4x8xf32> to vector<1x4x8xf32>
    %17 = vector.shape_cast %16 : vector<1x4x8xf32> to vector<4x8xf32>
    %18 = vector.shape_cast %17 : vector<4x8xf32> to vector<1x4x8xf32>
    %19 = vector.broadcast %18 : vector<1x4x8xf32> to vector<2x4x8xf32>
    "tpu.trace_start"() <{level = 10 : i32, message = "blc,bco->blo"}> : () -> ()
    %cst_6 = arith.constant dense<0.000000e+00> : vector<2x30x8xf32>
    %20 = tpu.matmul %15, %19, %cst_6 {dimension_numbers = #tpu.dot_dimension_numbers<[2], [1], [1], [2], [0, 0, 0, 1, 1, 2], [0], [0]>} : vector<2x30x4xf32>, vector<2x4x8xf32>, vector<2x30x8xf32> -> vector<2x30x8xf32>
    "tpu.trace_stop"() : () -> ()
    %21 = arith.addf %14, %20 : vector<2x30x8xf32>
    %c0_7 = arith.constant 0 : index
    %c0_8 = arith.constant 0 : index
    %c0_9 = arith.constant 0 : index
    %22 = vector.load %arg2[%c0_7, %c0_8, %c0_9] : memref<1x1x8xf32, #tpu.memory_space<vmem>>, vector<1x1x8xf32>
    %23 = vector.broadcast %22 : vector<1x1x8xf32> to vector<2x30x8xf32>
    %24 = arith.addf %21, %23 : vector<2x30x8xf32>
    %cst_10 = arith.constant 0.000000e+00 : f32
    %25 = vector.broadcast %cst_10 : f32 to vector<2x30x8xf32>
    %26 = arith.maximumf %24, %25 : vector<2x30x8xf32>
    %c0_11 = arith.constant 0 : index
    %c0_12 = arith.constant 0 : index
    %c0_13 = arith.constant 0 : index
    %27 = vector.load %arg8[%c0_11, %c0_12, %c0_13] : memref<2x30x8xf32, #tpu.memory_space<vmem>>, vector<2x30x8xf32>
    tpu.vector_store %arg8[%c0_11, %c0_12, %c0_13], %26 {strides = array<i32>} : memref<2x30x8xf32, #tpu.memory_space<vmem>>, vector<2x30x8xf32>,
    %c0_14 = arith.constant 0 : index
    %c0_15 = arith.constant 0 : index
    %c0_16 = arith.constant 0 : index
    %28 = tpu.strided_load %arg8[%c0_14, %c0_15, %c0_16] {strides = array<i32: 1, 2, 1>} : memref<2x30x8xf32, #tpu.memory_space<vmem>>, vector<2x15x8xf32>
    %c0_17 = arith.constant 0 : index
    %c1 = arith.constant 1 : index
    %c0_18 = arith.constant 0 : index
    %29 = tpu.strided_load %arg8[%c0_17, %c1, %c0_18] {strides = array<i32: 1, 2, 1>} : memref<2x30x8xf32, #tpu.memory_space<vmem>>, vector<2x15x8xf32>
    %30 = arith.maximumf %28, %29 : vector<2x15x8xf32>
    %c0_19 = arith.constant 0 : index
    %c0_20 = arith.constant 0 : index
    %c0_21 = arith.constant 0 : index
    %31 = vector.load %arg3[%c0_19, %c0_20, %c0_21] : memref<3x8x8xf32, #tpu.memory_space<vmem>>, vector<3x8x8xf32>
    %32 = vector.extract_strided_slice %30 {offsets = [0, 0, 0], sizes = [2, 13, 8], strides = [1, 1, 1]} : vector<2x15x8xf32> to vector<2x13x8xf32>
    %33 = vector.extract_strided_slice %31 {offsets = [0, 0, 0], sizes = [1, 8, 8], strides = [1, 1, 1]} : vector<3x8x8xf32> to vector<1x8x8xf32>
    %34 = vector.shape_cast %33 : vector<1x8x8xf32> to vector<8x8xf32>
    %35 = vector.shape_cast %34 : vector<8x8xf32> to vector<1x8x8xf32>
    %36 = vector.broadcast %35 : vector<1x8x8xf32> to vector<2x8x8xf32>
    "tpu.trace_start"() <{level = 10 : i32, message = "blc,bco->blo"}> : () -> ()
    %cst_22 = arith.constant dense<0.000000e+00> : vector<2x13x8xf32>
    %37 = tpu.matmul %32, %36, %cst_22 {dimension_numbers = #tpu.dot_dimension_numbers<[2], [1], [1], [2], [0, 0, 0, 1, 1, 2], [0], [0]>} : vector<2x13x8xf32>, vector<2x8x8xf32>, vector<2x13x8xf32> -> vector<2x13x8xf32>
    "tpu.trace_stop"() : () -> ()
    %38 = vector.extract_strided_slice %30 {offsets = [0, 1, 0], sizes = [2, 13, 8], strides = [1, 1, 1]} : vector<2x15x8xf32> to vector<2x13x8xf32>
    %39 = vector.extract_strided_slice %31 {offsets = [1, 0, 0], sizes = [1, 8, 8], strides = [1, 1, 1]} : vector<3x8x8xf32> to vector<1x8x8xf32>
    %40 = vector.shape_cast %39 : vector<1x8x8xf32> to vector<8x8xf32>
    %41 = vector.shape_cast %40 : vector<8x8xf32> to vector<1x8x8xf32>
    %42 = vector.broadcast %41 : vector<1x8x8xf32> to vector<2x8x8xf32>
    "tpu.trace_start"() <{level = 10 : i32, message = "blc,bco->blo"}> : () -> ()
    %cst_23 = arith.constant dense<0.000000e+00> : vector<2x13x8xf32>
    %43 = tpu.matmul %38, %42, %cst_23 {dimension_numbers = #tpu.dot_dimension_numbers<[2], [1], [1], [2], [0, 0, 0, 1, 1, 2], [0], [0]>} : vector<2x13x8xf32>, vector<2x8x8xf32>, vector<2x13x8xf32> -> vector<2x13x8xf32>
    "tpu.trace_stop"() : () -> ()
    %44 = arith.addf %37, %43 : vector<2x13x8xf32>
    %45 = vector.extract_strided_slice %30 {offsets = [0, 2, 0], sizes = [2, 13, 8], strides = [1, 1, 1]} : vector<2x15x8xf32> to vector<2x13x8xf32>
    %46 = vector.extract_strided_slice %31 {offsets = [2, 0, 0], sizes = [1, 8, 8], strides = [1, 1, 1]} : vector<3x8x8xf32> to vector<1x8x8xf32>
    %47 = vector.shape_cast %46 : vector<1x8x8xf32> to vector<8x8xf32>
    %48 = vector.shape_cast %47 : vector<8x8xf32> to vector<1x8x8xf32>
    %49 = vector.broadcast %48 : vector<1x8x8xf32> to vector<2x8x8xf32>
    "tpu.trace_start"() <{level = 10 : i32, message = "blc,bco->blo"}> : () -> ()
    %cst_24 = arith.constant dense<0.000000e+00> : vector<2x13x8xf32>
    %50 = tpu.matmul %45, %49, %cst_24 {dimension_numbers = #tpu.dot_dimension_numbers<[2], [1], [1], [2], [0, 0, 0, 1, 1, 2], [0], [0]>} : vector<2x13x8xf32>, vector<2x8x8xf32>, vector<2x13x8xf32> -> vector<2x13x8xf32>
    "tpu.trace_stop"() : () -> ()
    %51 = arith.addf %44, %50 : vector<2x13x8xf32>
    %c0_25 = arith.constant 0 : index
    %c0_26 = arith.constant 0 : index
    %c0_27 = arith.constant 0 : index
    %52 = vector.load %arg4[%c0_25, %c0_26, %c0_27] : memref<1x1x8xf32, #tpu.memory_space<vmem>>, vector<1x1x8xf32>
    %53 = vector.broadcast %52 : vector<1x1x8xf32> to vector<2x13x8xf32>
    %54 = arith.addf %51, %53 : vector<2x13x8xf32>
    %cst_28 = arith.constant 0.000000e+00 : f32
    %55 = vector.broadcast %cst_28 : f32 to vector<2x13x8xf32>
    %56 = arith.maximumf %54, %55 : vector<2x13x8xf32>
    %c0_29 = arith.constant 0 : index
    %c0_30 = arith.constant 0 : index
    %c0_31 = arith.constant 0 : index
    %57 = vector.load %arg8[%c0_29, %c0_30, %c0_31] : memref<2x30x8xf32, #tpu.memory_space<vmem>>, vector<2x13x8xf32>
    tpu.vector_store %arg8[%c0_29, %c0_30, %c0_31], %56 {strides = array<i32>} : memref<2x30x8xf32, #tpu.memory_space<vmem>>, vector<2x13x8xf32>,
    %c0_32 = arith.constant 0 : index
    %c0_33 = arith.constant 0 : index
    %c0_34 = arith.constant 0 : index
    %58 = tpu.strided_load %arg8[%c0_32, %c0_33, %c0_34] {strides = array<i32: 1, 2, 1>} : memref<2x30x8xf32, #tpu.memory_space<vmem>>, vector<2x6x8xf32>
    %c0_35 = arith.constant 0 : index
    %c1_36 = arith.constant 1 : index
    %c0_37 = arith.constant 0 : index
    %59 = tpu.strided_load %arg8[%c0_35, %c1_36, %c0_37] {strides = array<i32: 1, 2, 1>} : memref<2x30x8xf32, #tpu.memory_space<vmem>>, vector<2x6x8xf32>
    %60 = arith.maximumf %58, %59 : vector<2x6x8xf32>
    %cst_38 = arith.constant 0.000000e+00 : f32
    %61 = vector.broadcast %cst_38 : f32 to vector<2x1xf32>
    %62 = vector.extract_strided_slice %60 {offsets = [0, 0, 0], sizes = [2, 1, 8], strides = [1, 1, 1]} : vector<2x6x8xf32> to vector<2x1x8xf32>
    %63 = vector.shape_cast %62 : vector<2x1x8xf32> to vector<2x8xf32>
    %c0_39 = arith.constant 0 : index
    %c0_40 = arith.constant 0 : index
    %c0_41 = arith.constant 0 : index
    %64 = vector.load %arg5[%c0_39, %c0_40, %c0_41] : memref<6x8x1xf32, #tpu.memory_space<vmem>>, vector<1x8x1xf32>
    %65 = vector.shape_cast %64 : vector<1x8x1xf32> to vector<8x1xf32>
    %cst_42 = arith.constant dense<0.000000e+00> : vector<2x1xf32>
    %66 = tpu.matmul %63, %65, %cst_42 {dimension_numbers = #tpu.dot_dimension_numbers<[1], [0], [0], [1], [0, 0, 1, 1], [], []>} : vector<2x8xf32>, vector<8x1xf32>, vector<2x1xf32> -> vector<2x1xf32>
    %67 = arith.addf %61, %66 : vector<2x1xf32>
    %68 = vector.extract_strided_slice %60 {offsets = [0, 1, 0], sizes = [2, 1, 8], strides = [1, 1, 1]} : vector<2x6x8xf32> to vector<2x1x8xf32>
    %69 = vector.shape_cast %68 : vector<2x1x8xf32> to vector<2x8xf32>
    %c1_43 = arith.constant 1 : index
    %c0_44 = arith.constant 0 : index
    %c0_45 = arith.constant 0 : index
    %70 = vector.load %arg5[%c1_43, %c0_44, %c0_45] : memref<6x8x1xf32, #tpu.memory_space<vmem>>, vector<1x8x1xf32>
    %71 = vector.shape_cast %70 : vector<1x8x1xf32> to vector<8x1xf32>
    %cst_46 = arith.constant dense<0.000000e+00> : vector<2x1xf32>
    %72 = tpu.matmul %69, %71, %cst_46 {dimension_numbers = #tpu.dot_dimension_numbers<[1], [0], [0], [1], [0, 0, 1, 1], [], []>} : vector<2x8xf32>, vector<8x1xf32>, vector<2x1xf32> -> vector<2x1xf32>
    %73 = arith.addf %67, %72 : vector<2x1xf32>
    %74 = vector.extract_strided_slice %60 {offsets = [0, 2, 0], sizes = [2, 1, 8], strides = [1, 1, 1]} : vector<2x6x8xf32> to vector<2x1x8xf32>
    %75 = vector.shape_cast %74 : vector<2x1x8xf32> to vector<2x8xf32>
    %c2 = arith.constant 2 : index
    %c0_47 = arith.constant 0 : index
    %c0_48 = arith.constant 0 : index
    %76 = vector.load %arg5[%c2, %c0_47, %c0_48] : memref<6x8x1xf32, #tpu.memory_space<vmem>>, vector<1x8x1xf32>
    %77 = vector.shape_cast %76 : vector<1x8x1xf32> to vector<8x1xf32>
    %cst_49 = arith.constant dense<0.000000e+00> : vector<2x1xf32>
    %78 = tpu.matmul %75, %77, %cst_49 {dimension_numbers = #tpu.dot_dimension_numbers<[1], [0], [0], [1], [0, 0, 1, 1], [], []>} : vector<2x8xf32>, vector<8x1xf32>, vector<2x1xf32> -> vector<2x1xf32>
    %79 = arith.addf %73, %78 : vector<2x1xf32>
    %80 = vector.extract_strided_slice %60 {offsets = [0, 3, 0], sizes = [2, 1, 8], strides = [1, 1, 1]} : vector<2x6x8xf32> to vector<2x1x8xf32>
    %81 = vector.shape_cast %80 : vector<2x1x8xf32> to vector<2x8xf32>
    %c3 = arith.constant 3 : index
    %c0_50 = arith.constant 0 : index
    %c0_51 = arith.constant 0 : index
    %82 = vector.load %arg5[%c3, %c0_50, %c0_51] : memref<6x8x1xf32, #tpu.memory_space<vmem>>, vector<1x8x1xf32>
    %83 = vector.shape_cast %82 : vector<1x8x1xf32> to vector<8x1xf32>
    %cst_52 = arith.constant dense<0.000000e+00> : vector<2x1xf32>
    %84 = tpu.matmul %81, %83, %cst_52 {dimension_numbers = #tpu.dot_dimension_numbers<[1], [0], [0], [1], [0, 0, 1, 1], [], []>} : vector<2x8xf32>, vector<8x1xf32>, vector<2x1xf32> -> vector<2x1xf32>
    %85 = arith.addf %79, %84 : vector<2x1xf32>
    %86 = vector.extract_strided_slice %60 {offsets = [0, 4, 0], sizes = [2, 1, 8], strides = [1, 1, 1]} : vector<2x6x8xf32> to vector<2x1x8xf32>
    %87 = vector.shape_cast %86 : vector<2x1x8xf32> to vector<2x8xf32>
    %c4 = arith.constant 4 : index
    %c0_53 = arith.constant 0 : index
    %c0_54 = arith.constant 0 : index
    %88 = vector.load %arg5[%c4, %c0_53, %c0_54] : memref<6x8x1xf32, #tpu.memory_space<vmem>>, vector<1x8x1xf32>
    %89 = vector.shape_cast %88 : vector<1x8x1xf32> to vector<8x1xf32>
    %cst_55 = arith.constant dense<0.000000e+00> : vector<2x1xf32>
    %90 = tpu.matmul %87, %89, %cst_55 {dimension_numbers = #tpu.dot_dimension_numbers<[1], [0], [0], [1], [0, 0, 1, 1], [], []>} : vector<2x8xf32>, vector<8x1xf32>, vector<2x1xf32> -> vector<2x1xf32>
    %91 = arith.addf %85, %90 : vector<2x1xf32>
    %92 = vector.extract_strided_slice %60 {offsets = [0, 5, 0], sizes = [2, 1, 8], strides = [1, 1, 1]} : vector<2x6x8xf32> to vector<2x1x8xf32>
    %93 = vector.shape_cast %92 : vector<2x1x8xf32> to vector<2x8xf32>
    %c5 = arith.constant 5 : index
    %c0_56 = arith.constant 0 : index
    %c0_57 = arith.constant 0 : index
    %94 = vector.load %arg5[%c5, %c0_56, %c0_57] : memref<6x8x1xf32, #tpu.memory_space<vmem>>, vector<1x8x1xf32>
    %95 = vector.shape_cast %94 : vector<1x8x1xf32> to vector<8x1xf32>
    %cst_58 = arith.constant dense<0.000000e+00> : vector<2x1xf32>
    %96 = tpu.matmul %93, %95, %cst_58 {dimension_numbers = #tpu.dot_dimension_numbers<[1], [0], [0], [1], [0, 0, 1, 1], [], []>} : vector<2x8xf32>, vector<8x1xf32>, vector<2x1xf32> -> vector<2x1xf32>
    %97 = arith.addf %91, %96 : vector<2x1xf32>
    %c0_59 = arith.constant 0 : index
    %c0_60 = arith.constant 0 : index
    %98 = vector.load %arg6[%c0_59, %c0_60] : memref<1x1xf32, #tpu.memory_space<vmem>>, vector<1x1xf32>
    %99 = vector.broadcast %98 : vector<1x1xf32> to vector<2x1xf32>
    %100 = arith.addf %97, %99 : vector<2x1xf32>
    %c0_61 = arith.constant 0 : index
    %c0_62 = arith.constant 0 : index
    %101 = vector.load %arg7[%c0_61, %c0_62] : memref<2x1xf32, #tpu.memory_space<vmem>>, vector<2x1xf32>
    tpu.vector_store %arg7[%c0_61, %c0_62], %100 {strides = array<i32>} : memref<2x1xf32, #tpu.memory_space<vmem>>, vector<2x1xf32>,
    return
  }
}

</mosaic_0001>

<bundles_post_ra>
// kernel: forward.1
= control target key start
LH: loop header
LB: loop body
LE: loop exit
PB: predicated region body
PF: predicated region fallthrough
CT: control target
= control target key end

     0   :  { %vm60_vm0 = vcmask 1043456   ;;  %vm43_vm1 = vcmask 1046528   ;;  %vm51_vm2 = vcmask 31744   ;;  %vm442_vm3 = vcmask 1045504   ;;  %s2186_s1 = inlined_call_operand.vmem [shape: f32[3,4,8], index: 1, kind: input, shape index: {}]   ;;  %s2187_s0 = inlined_call_operand.vmem [shape: f32[2,32,4], index: 0, kind: input, shape index: {}]   ;;  %s2188_s3 = inlined_call_operand.vmem [shape: f32[3,8,8], index: 3, kind: input, shape index: {}]   ;;  %s2189_s2 = inlined_call_operand.vmem [shape: f32[1,1,8], index: 2, kind: input, shape index: {}]   ;;  %s2190_s5 = inlined_call_operand.vmem [shape: f32[6,8,1], index: 5, kind: input, shape index: {}]   ;;  %s2191_s4 = inlined_call_operand.vmem [shape: f32[1,1,8], index: 4, kind: input, shape index: {}]   ;;  %s2192_s6 = inlined_call_operand.<no memory space> [shape: f32[1,1], index: 6, kind: input, shape index: {}]   ;;  %s2193_s7 = inlined_call_operand.vmem [shape: f32[2,1], index: 7, kind: output, shape index: {}]  }
   0x1   :  { %v37_v0 = vld [vmem:[%s2186_s1 + $0x4] sm:$0xf]  ;;  %v2010_v2 = vld [vmem:[%s2187_s0 + $0x8] sm:$0xff]  ;;  %v36_v7 = vld [vmem:[%s2186_s1] sm:$0xf]  ;;  %vm677_vm4 = vcmask 64512  }
   0x2   :  { %v28_v1 = vld [vmem:[%s2187_s0] sm:$0xff]  ;;  %1825 = vmatprep.subr.msk.mxu0 %vm60_vm0, %v37_v0  ;;  %1833 = vmatprep.subr.msk.mxu1 %vm60_vm0, %v37_v0  ;;  %v45_v4 = vrot.slane %v2010_v2, 1  ;;  %v33_v6 = vld [vmem:[%s2187_s0 + $0x28] sm:$0xff]  ;;  %v30_v10 = vld [vmem:[%s2187_s0 + $0x10] sm:$0xff]  ;;  %v444_v26 = vrot.slane %v2010_v2, 2  ;;  %vm681_vm5 = vcmask 62464  }
   0x3   :  { %v44_v3 = vrot.slane %v28_v1, 1  ;;  %v32_v5 = vld [vmem:[%s2187_s0 + $0x20] sm:$0xff]  ;;  %1826 = vmatpush3.msk.msra.mxu0 %vm60_vm0, %v37_v0  ;;  %1834 = vmatpush3.msk.msra.mxu1 %vm60_vm0, %v37_v0  ;;  %v154_v9 = vrot.slane %v33_v6, 1  ;;  %v34_v11 = vld [vmem:[%s2187_s0 + $0x30] sm:$0xff]  ;;  %v31_v12 = vld [vmem:[%s2187_s0 + $0x18] sm:$0xff]  ;;  %v47_v14 = vrot.slane %v30_v10, 1 }
   0x4   :  { %v153_v8 = vrot.slane %v32_v5, 1  ;;  %1841 = vmatprep.subr.msk.mxu0 %vm60_vm0, %v36_v7  ;;  %v156_v15 = vrot.slane %v34_v11, 1  ;;  %1849 = vmatprep.subr.msk.mxu1 %vm60_vm0, %v36_v7  ;;  %v35_v16 = vld [vmem:[%s2187_s0 + $0x38] sm:$0xff]  ;;  %v49_v18 = vrot.slane %v31_v12, 1  ;;  %v38_v24 = vld [vmem:[%s2186_s1 + $0x8] sm:$0xf] }
   0x5   :  { %v46_v13 = vsel %vm43_vm1, %v44_v3, %v45_v4  ;;  %v158_v19 = vrot.slane %v35_v16, 1  ;;  %v48_v20 = vsel %vm43_vm1, %v45_v4, %v47_v14  ;;  %v443_v25 = vrot.slane %v28_v1, 2  ;;  %v707_v39 = vld [vmem:[%s2188_s3 + $0x8] sm:$0xff]  ;;  %v2093_v40 = vld [vmem:[%s2188_s3] sm:$0xff] }
   0x6   :  { %1827 = vmatprep.mubr.msk.f32.mxu0 %vm51_vm2, %v46_v13  ;;  %v155_v17 = vsel %vm43_vm1, %v153_v8, %v154_v9  ;;  %v157_v21 = vsel %vm43_vm1, %v154_v9, %v156_v15  ;;  %v50_v22 = vsel %vm43_vm1, %v47_v14, %v49_v18  ;;  %v546_v27 = vrot.slane %v32_v5, 2  ;;  %v1739_v41 = vld [vmem:[%s2189_s2] ss:$0 sm:$0xff] }
   0x7   :  { %1835 = vmatprep.mubr.msk.f32.mxu1 %vm51_vm2, %v155_v17  ;;  %1828 = vmatmul.mubr.msk.f32.vlgmr.msra.gmra.mrb[0].mxu0 %vm51_vm2, %v48_v20  ;;  %v159_v23 = vsel %vm43_vm1, %v156_v15, %v158_v19  ;;  %v547_v28 = vrot.slane %v33_v6, 2  ;;  %v446_v29 = vrot.slane %v30_v10, 2  ;;  %v549_v30 = vrot.slane %v34_v11, 2  ;;  %v708_v20 = vld [vmem:[%s2188_s3 + $0x10] sm:$0xff] }
   0x8   :  { %1836 = vmatmul.mubr.msk.f32.vlgmr.msra.gmra.mrb[0].mxu1 %vm51_vm2, %v157_v21  ;;  %1842 = vmatpush3.msk.msra.mxu0 %vm60_vm0, %v36_v7  ;;  %v445_v31 = vsel %vm442_vm3, %v443_v25, %v444_v26  ;;  %v448_v33 = vrot.slane %v31_v12, 2  ;;  %v551_v34 = vrot.slane %v35_v16, 2  ;;  %vm1960_vm6 = vmmov 0  }
   0x9   :  { %1850 = vmatpush3.msk.msra.mxu1 %vm60_vm0, %v36_v7  ;;  %1830 = vmatprep.mubr.msk.f32.mxu0 %vm51_vm2, %v50_v22  ;;  %v548_v32 = vsel %vm442_vm3, %v546_v27, %v547_v28  ;;  %v447_v35 = vsel %vm442_vm3, %v444_v26, %v446_v29  ;;  %v550_v36 = vsel %vm442_vm3, %v547_v28, %v549_v30  ;;  %v1959_v27 = vmov 0.0   ;;  %v1753_v28 = vld [vmem:[%s2190_s5 + $0x8] sm:$0xff] }
   0xa   :  { %1838 = vmatprep.mubr.msk.f32.mxu1 %vm51_vm2, %v159_v23  ;;  %1857 = vmatprep.subr.msk.mxu0 %vm60_vm0, %v38_v24  ;;  %v449_v37 = vsel %vm442_vm3, %v446_v29, %v448_v33  ;;  %v552_v38 = vsel %vm442_vm3, %v549_v30, %v551_v34  ;;  %v1229_v29 = vld [vmem:[%s2190_s5] sm:$0xff]  ;;  %vm1219_vm7 = vcmask 61440   ;;  %vm1235_vm8 = vcmask 1041409  }
   0xb   :  { %1865 = vmatprep.subr.msk.mxu1 %vm60_vm0, %v38_v24  ;;  %1831 = vmatmul.mubr.msk.f32.gmra.mrb[2].mxu0 %vm51_vm2, %v49_v18  ;;  %v1752_v30 = vld [vmem:[%s2191_s4] ss:$0 sm:$0xff]  ;;  %vm1703_vm9 = vcmask 1024  }
   0xc   :  { %1839 = vmatmul.mubr.msk.f32.gmra.mrb[2].mxu1 %vm51_vm2, %v158_v19  ;;  %1843 = vmatprep.mubr.msk.f32.mxu0 %vm51_vm2, %v28_v1 }
   0xd   :  { %1851 = vmatprep.mubr.msk.f32.mxu1 %vm51_vm2, %v32_v5 }
   0xf   :  { %1844 = vmatmul.mubr.msk.f32.vlgmr.msra.gmra.mrb[0].mxu0 %vm51_vm2, %v2010_v2 }
  0x10   :  { %1852 = vmatmul.mubr.msk.f32.vlgmr.msra.gmra.mrb[0].mxu1 %vm51_vm2, %v33_v6  ;;  %1858 = vmatpush3.msk.msra.mxu0 %vm60_vm0, %v38_v24 }
  0x11   :  { %1866 = vmatpush3.msk.msra.mxu1 %vm60_vm0, %v38_v24  ;;  %1846 = vmatprep.mubr.msk.f32.mxu0 %vm51_vm2, %v30_v10 }
  0x12   :  { %1854 = vmatprep.mubr.msk.f32.mxu1 %vm51_vm2, %v34_v11  ;;  %1873 = vmatprep.subr.mxu0 %v707_v39 }
  0x13   :  { %1847 = vmatmul.mubr.msk.f32.gmra.mrb[2].mxu0 %vm51_vm2, %v31_v12  ;;  %1878 = vmatprep.subr.mxu1 %v707_v39 }
  0x14   :  { %1855 = vmatmul.mubr.msk.f32.gmra.mrb[2].mxu1 %vm51_vm2, %v35_v16  ;;  %1859 = vmatprep.mubr.msk.f32.mxu0 %vm51_vm2, %v445_v31 }
  0x15   :  { %1867 = vmatprep.mubr.msk.f32.mxu1 %vm51_vm2, %v548_v32 }
  0x17   :  { %1860 = vmatmul.mubr.msk.f32.vlgmr.msra.gmra.mrb[0].mxu0 %vm51_vm2, %v447_v35 }
  0x18   :  { %1868 = vmatmul.mubr.msk.f32.vlgmr.msra.gmra.mrb[0].mxu1 %vm51_vm2, %v550_v36  ;;  %1862 = vmatprep.mubr.msk.f32.mxu0 %vm51_vm2, %v449_v37 }
  0x19   :  { %1870 = vmatprep.mubr.msk.f32.mxu1 %vm51_vm2, %v552_v38  ;;  %1874 = vmatpush3.msra.mxu0 %v707_v39 }
  0x1a   :  { %1879 = vmatpush3.msra.mxu1 %v707_v39  ;;  %1883 = vmatprep.subr.mxu0 %v2093_v40 }
  0x1b   :  { %1863 = vmatmul.mubr.msk.f32.gmra.mrb[2].mxu0 %vm51_vm2, %v448_v33  ;;  %1888 = vmatprep.subr.mxu1 %v2093_v40 }
  0x1c   :  { %1871 = vmatmul.mubr.msk.f32.gmra.mrb[2].mxu1 %vm51_vm2, %v551_v34 }
  0xea   :  { %v1861_v42 = vpop.f32.mrb[0].mxu0 }
  0xeb   :  { %v1869_v43 = vpop.f32.mrb[0].mxu1  ;;  %v662_v44 = vadd.f32 %v1861_v42, %v1739_v41  ;;  %v527_v46 = vpop.f32.mrb[1].mxu0 }
  0xec   :  { %v666_v45 = vadd.f32 %v1869_v43, %v1739_v41  ;;  %v627_v47 = vpop.f32.mrb[1].mxu1  ;;  %v661_v48 = vadd.f32 %v1739_v41, %v527_v46 }
  0xed   :  { %v665_v49 = vadd.f32 %v1739_v41, %v627_v47  ;;  %v670_v50 = vmax.f32 %v662_v44, 0.0 }
  0xee   :  { %v674_v51 = vmax.f32 %v666_v45, 0.0  ;;  %v669_v52 = vmax.f32 %v661_v48, 0.0  ;;  %v1864_v54 = vpop.f32.mrb[2].mxu0 }
  0xef   :  { %v673_v53 = vmax.f32 %v665_v49, 0.0  ;;  %v1872_v55 = vpop.f32.mrb[2].mxu1  ;;  %679 = vst.msk [vmem:[#allocation2 + $0x8] sm:$0xff] %vm677_vm4, %v670_v50  ;;  %v664_v56 = vadd.f32 %v1864_v54, %v1739_v41  ;;  %v537_v58 = vpop.f32.mrb[3].mxu0 }
  0xf0   :  { %684 = vst.msk [vmem:[#allocation2 + $0x28] sm:$0xff] %vm677_vm4, %v674_v51  ;;  %v668_v57 = vadd.f32 %v1872_v55, %v1739_v41  ;;  %v637_v59 = vpop.f32.mrb[3].mxu1  ;;  %678 = vst.msk [vmem:[#allocation2] sm:$0xff] %vm677_vm4, %v669_v52  ;;  %v663_v60 = vadd.f32 %v1739_v41, %v537_v58  ;;  %v1756_v51 = vld [vmem:[%s2190_s5 + $0x10] sm:$0xff] }
  0xf1   :  { %683 = vst.msk [vmem:[#allocation2 + $0x20] sm:$0xff] %vm677_vm4, %v673_v53  ;;  %v667_v61 = vadd.f32 %v1739_v41, %v637_v59  ;;  %v672_v62 = vmax.f32 %v664_v56, 0.0  ;;  %v1758_v53 = vld [vmem:[%s2190_s5 + $0x18] sm:$0xff]  ;;  %v1760_v59 = vld [vmem:[%s2190_s5 + $0x20] sm:$0xff] }
  0xf2   :  { %v676_v63 = vmax.f32 %v668_v57, 0.0  ;;  %v671_v0 = vmax.f32 %v663_v60, 0.0 }
  0xf3   :  { %v675_v1 = vmax.f32 %v667_v61, 0.0  ;;  %682 = vst.msk [vmem:[#allocation2 + $0x18] sm:$0x3f] %vm681_vm5, %v672_v62  ;;  %v1762_v61 = vld [vmem:[%s2190_s5 + $0x28] sm:$0xff] }
  0xf4   :  { %686 = vst.msk [vmem:[#allocation2 + $0x38] sm:$0x3f] %vm681_vm5, %v676_v63 }
  0xf5   :  { %680 = vst.msk [vmem:[#allocation2 + $0x10] sm:$0xff] %vm677_vm4, %v671_v0  ;;  %685 = vst.msk [vmem:[#allocation2 + $0x30] sm:$0xff] %vm677_vm4, %v675_v1 }
  0xf7   :  { %v687_v2 = vld [vmem:[#allocation2] ss:$2 sm:$0xff]  ;;  %v695_v3 = vld [vmem:[#allocation2 + $0x1] ss:$2 sm:$0xff] }
  0xf8   :  { %v691_v4 = vld [vmem:[#allocation2 + $0x20] ss:$2 sm:$0xff]  ;;  %v699_v5 = vld [vmem:[#allocation2 + $0x21] ss:$2 sm:$0xff]  ;;  %v702_v6 = vmax.f32 %v687_v2, %v695_v3 }
  0xf9   :  { %v704_v9 = vmax.f32 %v691_v4, %v699_v5  ;;  %v12_v5 = vstv %s2192_s6 }
  0xfa   :  { %v711_v14 = vrot.slane %v702_v6, 1  ;;  %v1035_v23 = vrot.slane %v702_v6, 2  ;;  %13 = vst [vmem:[#allocation3] sm:$0x1] %v12_v5 }
  0xfb   :  { %v795_v16 = vrot.slane %v704_v9, 1  ;;  %v1117_v24 = vrot.slane %v704_v9, 2 }
  0xfc   :  { %v689_v7 = vld [vmem:[#allocation2 + $0x10] ss:$2 sm:$0x7f]  ;;  %v697_v8 = vld [vmem:[#allocation2 + $0x11] ss:$2 sm:$0x7f] }
  0xfd   :  { %v703_v10 = vmax.f32 %v689_v7, %v697_v8  ;;  %v693_v11 = vld [vmem:[#allocation2 + $0x30] ss:$2 sm:$0x7f]  ;;  %v701_v12 = vld [vmem:[#allocation2 + $0x31] ss:$2 sm:$0x7f] }
  0xfe   :  { %v705_v13 = vmax.f32 %v693_v11, %v701_v12 }
  0xff   :  { %v712_v15 = vrot.slane %v703_v10, 1  ;;  %v1036_v21 = vrot.slane %v703_v10, 2 }
 0x100   :  { %v796_v17 = vrot.slane %v705_v13, 1  ;;  %v1118_v22 = vrot.slane %v705_v13, 2 }
 0x101   :  { %v713_v18 = vsel %vm43_vm1, %v711_v14, %v712_v15  ;;  %v1037_v25 = vsel %vm442_vm3, %v1035_v23, %v1036_v21 }
 0x102   :  { %1875 = vmatprep.mubr.msk.f32.mxu0 %vm677_vm4, %v713_v18  ;;  %v797_v19 = vsel %vm43_vm1, %v795_v16, %v796_v17  ;;  %v1119_v26 = vsel %vm442_vm3, %v1117_v24, %v1118_v22 }
 0x103   :  { %1880 = vmatprep.mubr.msk.f32.mxu1 %vm677_vm4, %v797_v19  ;;  %1876 = vmatmul.mubr.msk.f32.vlgmr.msra.gmra.mrb[4].mxu0 %vm677_vm4, %v712_v15 }
 0x104   :  { %1881 = vmatmul.mubr.msk.f32.vlgmr.msra.gmra.mrb[4].mxu1 %vm677_vm4, %v796_v17  ;;  %1884 = vmatpush3.msra.mxu0 %v2093_v40 }
 0x105   :  { %1885 = vmatprep.mubr.msk.f32.mxu0 %vm677_vm4, %v702_v6  ;;  %1890 = vmatprep.mubr.msk.f32.mxu1 %vm677_vm4, %v704_v9 }
 0x106   :  { %1889 = vmatpush3.msra.mxu1 %v2093_v40  ;;  %1893 = vmatprep.subr.mxu0 %v708_v20 }
 0x107   :  { %1898 = vmatprep.subr.mxu1 %v708_v20 }
 0x10b   :  { %1886 = vmatmul.mubr.msk.f32.vlgmr.msra.gmra.mrb[4].mxu0 %vm677_vm4, %v703_v10 }
 0x10c   :  { %1891 = vmatmul.mubr.msk.f32.vlgmr.msra.gmra.mrb[4].mxu1 %vm677_vm4, %v705_v13  ;;  %1894 = vmatpush3.msra.mxu0 %v708_v20 }
 0x10d   :  { %1895 = vmatprep.mubr.msk.f32.mxu0 %vm677_vm4, %v1037_v25  ;;  %1900 = vmatprep.mubr.msk.f32.mxu1 %vm677_vm4, %v1119_v26 }
 0x10e   :  { %1899 = vmatpush3.msra.mxu1 %v708_v20  ;;  %1903 = vmatprep.subr.mxu0 %v1959_v27 }
 0x10f   :  { %1908 = vmatprep.subr.mxu1 %v1959_v27 }
 0x113   :  { %1896 = vmatmul.mubr.msk.f32.vlgmr.msra.gmra.mrb[4].mxu0 %vm677_vm4, %v1036_v21  ;;  %v1764_v21 = vld [vmem:[#allocation3] ss:$0 sm:$0xff] }
 0x114   :  { %1901 = vmatmul.mubr.msk.f32.vlgmr.msra.gmra.mrb[4].mxu1 %vm677_vm4, %v1118_v22  ;;  %1904 = vmatpush3.msra.mxu0 %v1753_v28 }
 0x115   :  { %1909 = vmatpush3.msra.mxu1 %v1229_v29  ;;  %1905 = vmatprep.mubr.msk.f32.mxu0 %vm1960_vm6, %v1959_v27 }
 0x116   :  { %1910 = vmatprep.mubr.msk.f32.mxu1 %vm1960_vm6, %v1959_v27  ;;  %1913 = vmatprep.subr.mxu0 %v1959_v27 }
 0x117   :  { %1918 = vmatprep.subr.mxu1 %v1959_v27 }
 0x1e6   :  { %v1897_v31 = vpop.f32.mrb[4].mxu0 }
 0x1e7   :  { %v1211_v32 = vadd.f32 %v1897_v31, %v1752_v30  ;;  %v1902_v33 = vpop.f32.mrb[4].mxu1  ;;  %v1108_v34 = vpop.f32.mrb[5].mxu0 }
 0x1e8   :  { %v1213_v35 = vadd.f32 %v1902_v33, %v1752_v30  ;;  %v1210_v36 = vadd.f32 %v1752_v30, %v1108_v34  ;;  %v1190_v37 = vpop.f32.mrb[5].mxu1 }
 0x1e9   :  { %v1215_v38 = vmax.f32 %v1211_v32, 0.0  ;;  %v1212_v39 = vadd.f32 %v1752_v30, %v1190_v37 }
 0x1ea   :  { %v1217_v40 = vmax.f32 %v1213_v35, 0.0  ;;  %v1214_v41 = vmax.f32 %v1210_v36, 0.0 }
 0x1eb   :  { %1220 = vst.msk [vmem:[#allocation2 + $0x8] sm:$0x1f] %vm1219_vm7, %v1215_v38  ;;  %v1216_v42 = vmax.f32 %v1212_v39, 0.0 }
 0x1ec   :  { %1222 = vst.msk [vmem:[#allocation2 + $0x28] sm:$0x1f] %vm1219_vm7, %v1217_v40 }
 0x1ed   :  { %1218 = vst.msk [vmem:[#allocation2] sm:$0xff] %vm677_vm4, %v1214_v41  ;;  %1221 = vst.msk [vmem:[#allocation2 + $0x20] sm:$0xff] %vm677_vm4, %v1216_v42 }
 0x1f4   :  { %v1223_v43 = vld [vmem:[#allocation2] ss:$2 sm:$0x3f]  ;;  %v1225_v44 = vld [vmem:[#allocation2 + $0x1] ss:$2 sm:$0x3f] }
 0x1f5   :  { %v1224_v45 = vld [vmem:[#allocation2 + $0x20] ss:$2 sm:$0x3f]  ;;  %v1226_v46 = vld [vmem:[#allocation2 + $0x21] ss:$2 sm:$0x3f]  ;;  %v1227_v47 = vmax.f32 %v1223_v43, %v1225_v44 }
 0x1f6   :  { %v1228_v48 = vmax.f32 %v1224_v45, %v1226_v46 }
 0x1f7   :  { %v1234_v49 = vrot.slane %v1227_v47, 1  ;;  %v1385_v54 = vrot.slane %v1227_v47, 2  ;;  %v1463_v57 = vrot.slane %v1227_v47, 3  ;;  %v1541_v62 = vrot.slane %v1227_v47, 4 }
 0x1f8   :  { %v1309_v50 = vrot.slane %v1228_v48, 7  ;;  %v1386_v55 = vrot.slane %v1228_v48, 1  ;;  %v1464_v58 = vrot.slane %v1228_v48, 2  ;;  %v1542_v63 = vrot.slane %v1228_v48, 3 }
 0x1f9   :  { %v1236_v52 = vsel %vm1235_vm8, %v1228_v48, %v1234_v49  ;;  %v1619_v1 = vrot.slane %v1227_v47, 5  ;;  %v1620_v2 = vrot.slane %v1228_v48, 4 }
 0x1fa   :  { %1906 = vmatmul.mubr.msk.f32.vlgmr.msra.gmra.mrb[6].mxu0 %vm677_vm4, %v1236_v52  ;;  %v1310_v56 = vsel %vm1235_vm8, %v1309_v50, %v1227_v47  ;;  %v1387_v60 = vsel %vm1235_vm8, %v1386_v55, %v1385_v54  ;;  %v1465_v0 = vsel %vm1235_vm8, %v1464_v58, %v1463_v57  ;;  %v1543_v3 = vsel %vm1235_vm8, %v1542_v63, %v1541_v62 }
 0x1fb   :  { %1911 = vmatmul.mubr.msk.f32.vlgmr.msra.gmra.mrb[6].mxu1 %vm677_vm4, %v1310_v56  ;;  %1914 = vmatpush3.msra.mxu0 %v1756_v51  ;;  %v1621_v4 = vsel %vm1235_vm8, %v1620_v2, %v1619_v1 }
 0x1fc   :  { %1919 = vmatpush3.msra.mxu1 %v1758_v53  ;;  %1915 = vmatprep.mubr.msk.f32.mxu0 %vm1960_vm6, %v1959_v27 }
 0x1fd   :  { %1920 = vmatprep.mubr.msk.f32.mxu1 %vm1960_vm6, %v1959_v27  ;;  %1923 = vmatprep.subr.mxu0 %v1959_v27 }
 0x1fe   :  { %1916 = vmatmul.mubr.msk.f32.vlgmr.msra.gmra.mrb[8].mxu0 %vm677_vm4, %v1387_v60  ;;  %1928 = vmatprep.subr.mxu1 %v1959_v27 }
 0x1ff   :  { %1921 = vmatmul.mubr.msk.f32.vlgmr.msra.gmra.mrb[8].mxu1 %vm677_vm4, %v1465_v0  ;;  %1924 = vmatpush3.msra.mxu0 %v1760_v59 }
 0x200   :  { %1929 = vmatpush3.msra.mxu1 %v1762_v61  ;;  %1925 = vmatprep.mubr.msk.f32.mxu0 %vm1960_vm6, %v1959_v27 }
 0x201   :  { %1930 = vmatprep.mubr.msk.f32.mxu1 %vm1960_vm6, %v1959_v27 }
 0x202   :  { %1926 = vmatmul.mubr.msk.f32.vlgmr.msra.gmra.mrb[10].mxu0 %vm677_vm4, %v1543_v3 }
 0x203   :  { %1931 = vmatmul.mubr.msk.f32.vlgmr.msra.gmra.mrb[10].mxu1 %vm677_vm4, %v1621_v4 }
 0x2cd   :  { %v1305_v6 = vpop.f32.mrb[6].mxu0 }
 0x2ce   :  { %v1379_v7 = vpop.f32.mrb[6].mxu1  ;;  %v1907_v8 = vpop.f32.mrb[7].mxu0 }
 0x2cf   :  { %v1380_v9 = vadd.f32 %v1379_v7, %v1305_v6  ;;  %v1912_v10 = vpop.f32.mrb[7].mxu1 }
 0x2d1   :  { %v1456_v11 = vpop.f32.mrb[8].mxu0 }
 0x2d2   :  { %v1460_v12 = vadd.f32 %v1456_v11, %v1380_v9  ;;  %v1534_v13 = vpop.f32.mrb[8].mxu1  ;;  %v1917_v14 = vpop.f32.mrb[9].mxu0 }
 0x2d3   :  { %v1922_v15 = vpop.f32.mrb[9].mxu1 }
 0x2d4   :  { %v1538_v16 = vadd.f32 %v1534_v13, %v1460_v12 }
 0x2d5   :  { %v1612_v17 = vpop.f32.mrb[10].mxu0 }
 0x2d6   :  { %v1616_v18 = vadd.f32 %v1612_v17, %v1538_v16  ;;  %v1690_v19 = vpop.f32.mrb[10].mxu1  ;;  %v1927_v20 = vpop.f32.mrb[11].mxu0 }
 0x2d7   :  { %v1932_v22 = vpop.f32.mrb[11].mxu1 }
 0x2d8   :  { %v1694_v23 = vadd.f32 %v1690_v19, %v1616_v18 }
 0x2da   :  { %v1702_v24 = vadd.f32 %v1764_v21, %v1694_v23 }
 0x2dc   :  { %1704 = vst.msk [vmem:[%s2193_s7] sm:$0x3] %vm1703_vm9, %v1702_v24 }

</bundles_post_ra>
